<compile_context>
chip_gen: v6e
topology: v6e:2x2x1
jax: 0.10.0
libtpu: 0.0.40
codegen_flags: <defaults>
</compile_context>

<pallas_src>
import functools

import jax
import jax.numpy as jnp
from jax import lax
from jax.experimental import pallas as pl
from jax.experimental.pallas import tpu as pltpu


def _round_up(x, m):
    return ((x + m - 1) // m) * m


def _mgh_kernel(x_ref, w_ref, b_ref, out_ref, *, o_real, min_var):
    """One batch tile.

    x_ref:   (tb, D)           input dtype (cast to compute dtype in-VMEM)
    w_ref:   (D, n_fused)      [W1 | W2 | W3 | 0-pad] in compute dtype
    b_ref:   (1, n_fused)      [b1 | b2 | b3 | 0-pad] f32
    out_ref: (tb, n_fused)     fused [mus | sigs | ws | junk-pad]
    """
    # Single fused MXU matmul, f32 accumulation.
    acc = jnp.dot(x_ref[...].astype(w_ref.dtype), w_ref[...],
                  preferred_element_type=jnp.float32)
    acc = acc + b_ref[...]

    tb, n_fused = acc.shape
    col = lax.broadcasted_iota(jnp.int32, (tb, n_fused), 1)
    is_mu = col < o_real
    is_sig = (col >= o_real) & (col < 2 * o_real)
    is_w = (col >= 2 * o_real) & (col < 3 * o_real)

    # sigs = sqrt(softplus(l2) + min_var)   (numerically stable softplus)
    sp = jnp.maximum(acc, 0.0) + jnp.log1p(jnp.exp(-jnp.abs(acc)))
    sig_val = jnp.sqrt(sp + min_var)

    # ws = exp(log_softmax(l3)) == softmax over the ws columns only.  Non-ws
    # columns are masked to a large finite negative in the f32 accumulator so
    # they contribute exactly 0 to max/sum (no -inf arithmetic anywhere).
    l3 = jnp.where(is_w, acc, -1e30)
    m = jnp.max(l3, axis=-1, keepdims=True)
    e = jnp.exp(l3 - m)
    denom = jnp.sum(e, axis=-1, keepdims=True)
    r = pl.reciprocal(denom, approx=True)     # EUP slot (otherwise idle)
    r = r * (2.0 - denom * r)                 # one Newton step: ~1e-7 rel err
    w_val = e * r

    out = jnp.where(is_mu, acc, jnp.where(is_sig, sig_val, w_val))
    out_ref[...] = out.astype(out_ref.dtype)


def pack_params(params, *, compute_dtype=jnp.bfloat16):
    """Pack W1|W2|W3 / b1|b2|b3 into one lane-dense slab. Do this ONCE.

    Returns (w_packed (D, n_fused), b_packed (1, n_fused) f32, o_real).
    Use compute_dtype=jnp.float32 for strict parity with an f32 torch module.
    """
    o_real = params["w1"].shape[1]
    n_fused = _round_up(3 * o_real, 128)
    pad = n_fused - 3 * o_real

    w_packed = jnp.concatenate([params["w1"], params["w2"], params["w3"]],
                               axis=1)
    w_packed = jnp.pad(w_packed, ((0, 0), (0, pad))).astype(compute_dtype)

    b_packed = jnp.concatenate(
        [params["b1"].reshape(1, -1), params["b2"].reshape(1, -1),
         params["b3"].reshape(1, -1)], axis=1).astype(jnp.float32)
    b_packed = jnp.pad(b_packed, ((0, 0), (0, pad)))
    return w_packed, b_packed, o_real


def mixture_gaussian_head_packed(x, w_packed, b_packed, *, o_real,
                                 min_var=0.0, block_b=1024,
                                 out_dtype=jnp.float32, core_parallel=False):
    """Fused forward. Returns (B, n_fused) with [mus | sigs | ws | pad] columns.

    Keeping this fused layout downstream avoids any post-kernel re-slicing
    HBM pass; slice columns [0:O], [O:2O], [2O:3O] only where needed.
    """
    B, D = x.shape
    n_fused = w_packed.shape[1]

    tb = min(block_b, _round_up(B, 8))
    b_pad = _round_up(B, tb)
    if core_parallel and b_pad // tb < 2 and tb >= 16:
        # Guarantee >=2 grid steps so both v7x TensorCores get work.
        tb = _round_up(tb // 2, 8)
        b_pad = _round_up(B, tb)
    x_p = x if b_pad == B else jnp.pad(x, ((0, b_pad - B), (0, 0)))
    grid = (b_pad // tb,)

    sem = pltpu.CORE_PARALLEL if core_parallel else "parallel"
    kernel = functools.partial(_mgh_kernel, o_real=int(o_real),
                               min_var=float(min_var))

    fused = pl.pallas_call(
        kernel,
        out_shape=jax.ShapeDtypeStruct((b_pad, n_fused), out_dtype),
        grid=grid,
        in_specs=[
            # x: tiled over batch, double-buffered by the pipeline.
            pl.BlockSpec((tb, D), lambda i: (i, 0)),
            # packed weights / biases: constant index -> VMEM-resident.
            pl.BlockSpec((D, n_fused), lambda i: (0, 0)),
            pl.BlockSpec((1, n_fused), lambda i: (0, 0)),
        ],
        out_specs=pl.BlockSpec((tb, n_fused), lambda i: (i, 0)),
        compiler_params=pltpu.CompilerParams(dimension_semantics=(sem,)),
    )(x_p, w_packed, b_packed)

    return fused if b_pad == B else fused[:B]


def mixture_gaussian_head(x, params, *, min_var=0.0,
                          compute_dtype=jnp.bfloat16, **kwargs):
    """Torch-like convenience API: returns (mus, sigs, ws), each (B, O).

    Prefer pack_params() + mixture_gaussian_head_packed() in production so
    packing happens once and the fused layout can flow to the consumer.
    """
    w_packed, b_packed, o_real = pack_params(params, compute_dtype=compute_dtype)
    fused = mixture_gaussian_head_packed(x, w_packed, b_packed, o_real=o_real,
                                         min_var=min_var, **kwargs)
    return (fused[:, 0:o_real], fused[:, o_real:2 * o_real],
            fused[:, 2 * o_real:3 * o_real])


def init_params(key, input_size, out_size, n_mix):
    """Deterministic synthetic init (shapes match the PyTorch module)."""
    O = out_size * n_mix
    ks = jax.random.split(key, 6)
    scale = 1.0 / jnp.sqrt(jnp.float32(input_size))
    mk_w = lambda k: jax.random.uniform(k, (input_size, O), jnp.float32,
                                        minval=-scale, maxval=scale)
    mk_b = lambda k: jax.random.uniform(k, (1, O), jnp.float32,
                                        minval=-scale, maxval=scale)
    return {
        "w1": mk_w(ks[0]), "b1": mk_b(ks[1]),
        "w2": mk_w(ks[2]), "b2": mk_b(ks[3]),
        "w3": mk_w(ks[4]), "b3": mk_b(ks[5]),
    }


if __name__ == "__main__":
    input_size = 32
    out_size = 8
    n_mix = 5
    min_var = 0.0
    batch = 8

    key = jax.random.PRNGKey(0)
    kx, kp = jax.random.split(key)
    x = jax.random.normal(kx, (batch, input_size), jnp.float32)
    params = init_params(kp, input_size, out_size, n_mix)

    # Prepack weights/biases ONCE (outside the per-call path).
    w_packed, b_packed, O = pack_params(params)   # n_fused = 128 here

    fwd = jax.jit(functools.partial(mixture_gaussian_head_packed,
                                    o_real=O, min_var=min_var))
    fused = fwd(x, w_packed, b_packed)
    jax.block_until_ready(fused)

    mus = fused[:, 0:O]
    sigs = fused[:, O:2 * O]
    ws = fused[:, 2 * O:3 * O]

    # Reference computed with the same bf16-rounded MXU operands the kernel
    # uses (f32 accumulation both ways).  NOTE: pass compute_dtype=jnp.float32
    # to pack_params for strict parity with an f32 PyTorch module.
    xr = x.astype(jnp.bfloat16).astype(jnp.float32)
    w1 = params["w1"].astype(jnp.bfloat16).astype(jnp.float32)
    w2 = params["w2"].astype(jnp.bfloat16).astype(jnp.float32)
    w3 = params["w3"].astype(jnp.bfloat16).astype(jnp.float32)
    l1 = xr @ w1 + params["b1"]
    l2 = xr @ w2 + params["b2"]
    l3 = xr @ w3 + params["b3"]
    ref_mus = l1
    ref_sigs = jnp.sqrt(jax.nn.softplus(l2) + min_var)
    ref_ws = jnp.exp(jax.nn.log_softmax(l3, axis=-1))

    assert fused.shape == (batch, 128)
    assert mus.shape == (batch, O) and sigs.shape == (batch, O) and ws.shape == (batch, O)
    assert jnp.allclose(mus, ref_mus, atol=1e-3, rtol=1e-3)
    assert jnp.allclose(sigs, ref_sigs, atol=1e-3, rtol=1e-3)
    assert jnp.allclose(ws, ref_ws, atol=1e-3, rtol=1e-3)
    assert jnp.allclose(jnp.sum(ws, axis=-1), 1.0, atol=1e-4)

    # Also exercise the torch-like convenience wrapper.
    mus2, sigs2, ws2 = jax.jit(
        functools.partial(mixture_gaussian_head, min_var=min_var))(x, params)
    jax.block_until_ready((mus2, sigs2, ws2))
    assert jnp.allclose(mus2, ref_mus, atol=1e-3, rtol=1e-3)
    assert jnp.allclose(sigs2, ref_sigs, atol=1e-3, rtol=1e-3)
    assert jnp.allclose(ws2, ref_ws, atol=1e-3, rtol=1e-3)

    # TODO(synk): MixtureGaussianDist object construction (sampling/log_prob)
    # is left to the caller; the kernel returns its parameter tensors.
    print("KERNEL_OK")
</pallas_src>

<mosaic_0001>
module attributes {stable_mosaic.version = 11 : i64} {
  func.func @_mgh_kernel(%arg0: i32, %arg1: memref<8x32xf32, #tpu.memory_space<vmem>>, %arg2: memref<32x128xbf16, #tpu.memory_space<vmem>>, %arg3: memref<1x128xf32, #tpu.memory_space<vmem>>, %arg4: memref<8x128xf32, #tpu.memory_space<vmem>>) attributes {dimension_semantics = [#tpu.dimension_semantics<parallel>], iteration_bounds = array<i64: 1>, scalar_prefetch = 0 : i64, scratch_operands = 0 : i64, tpu.core_type = #tpu.core_type<tc>, window_params = [{transform_indices = @transform_0, window_bounds = array<i64: 8, 32>}, {pipeline_mode = #tpu.pipeline_mode<synchronous>, transform_indices = @transform_1, window_bounds = array<i64: 32, 128>}, {pipeline_mode = #tpu.pipeline_mode<synchronous>, transform_indices = @transform_2, window_bounds = array<i64: 1, 128>}, {transform_indices = @transform_3, window_bounds = array<i64: 8, 128>}]} {
    %c0 = arith.constant 0 : index
    %c0_0 = arith.constant 0 : index
    %0 = vector.load %arg1[%c0, %c0_0] : memref<8x32xf32, #tpu.memory_space<vmem>>, vector<8x32xf32>
    %1 = arith.truncf %0 : vector<8x32xf32> to vector<8x32xbf16>
    %c0_1 = arith.constant 0 : index
    %c0_2 = arith.constant 0 : index
    %2 = vector.load %arg2[%c0_1, %c0_2] : memref<32x128xbf16, #tpu.memory_space<vmem>>, vector<32x128xbf16>
    %cst = arith.constant dense<0.000000e+00> : vector<8x128xf32>
    %3 = tpu.matmul %1, %2, %cst {dimension_numbers = #tpu.dot_dimension_numbers<[1], [0], [0], [1], [0, 0, 1, 1], [], []>} : vector<8x32xbf16>, vector<32x128xbf16>, vector<8x128xf32> -> vector<8x128xf32>
    %c0_3 = arith.constant 0 : index
    %c0_4 = arith.constant 0 : index
    %4 = vector.load %arg3[%c0_3, %c0_4] : memref<1x128xf32, #tpu.memory_space<vmem>>, vector<1x128xf32>
    %5 = vector.broadcast %4 : vector<1x128xf32> to vector<8x128xf32>
    %6 = arith.addf %3, %5 : vector<8x128xf32>
    %7 = tpu.iota {dimensions = array<i32: 1>} : vector<8x128xi32>
    %c40_i32 = arith.constant 40 : i32
    %8 = vector.broadcast %c40_i32 : i32 to vector<8x128xi32>
    %9 = arith.cmpi slt, %7, %8 : vector<8x128xi32>
    %c40_i32_5 = arith.constant 40 : i32
    %10 = vector.broadcast %c40_i32_5 : i32 to vector<8x128xi32>
    %11 = arith.cmpi sge, %7, %10 : vector<8x128xi32>
    %c80_i32 = arith.constant 80 : i32
    %12 = vector.broadcast %c80_i32 : i32 to vector<8x128xi32>
    %13 = arith.cmpi slt, %7, %12 : vector<8x128xi32>
    %14 = arith.andi %11, %13 : vector<8x128xi1>
    %c80_i32_6 = arith.constant 80 : i32
    %15 = vector.broadcast %c80_i32_6 : i32 to vector<8x128xi32>
    %16 = arith.cmpi sge, %7, %15 : vector<8x128xi32>
    %c120_i32 = arith.constant 120 : i32
    %17 = vector.broadcast %c120_i32 : i32 to vector<8x128xi32>
    %18 = arith.cmpi slt, %7, %17 : vector<8x128xi32>
    %19 = arith.andi %16, %18 : vector<8x128xi1>
    %cst_7 = arith.constant 0.000000e+00 : f32
    %20 = vector.broadcast %cst_7 : f32 to vector<8x128xf32>
    %21 = arith.maximumf %6, %20 : vector<8x128xf32>
    %22 = math.absf %6 : vector<8x128xf32>
    %cst_8 = arith.constant 0.000000e+00 : f32
    %23 = vector.broadcast %cst_8 : f32 to vector<8x128xf32>
    %24 = arith.subf %23, %22 : vector<8x128xf32>
    %25 = math.exp %24 : vector<8x128xf32>
    %26 = math.log1p %25 : vector<8x128xf32>
    %27 = arith.addf %21, %26 : vector<8x128xf32>
    %cst_9 = arith.constant 0.000000e+00 : f32
    %28 = vector.broadcast %cst_9 : f32 to vector<8x128xf32>
    %29 = arith.addf %27, %28 : vector<8x128xf32>
    %30 = math.sqrt %29 : vector<8x128xf32>
    %cst_10 = arith.constant -1.000000e+30 : f32
    %31 = vector.broadcast %cst_10 : f32 to vector<8x128xf32>
    %32 = arith.select %19, %6, %31 : vector<8x128xi1>, vector<8x128xf32>
    %cst_11 = arith.constant dense<0xFF800000> : vector<8xf32>
    %33 = vector.multi_reduction <maximumf>, %32, %cst_11 [1] : vector<8x128xf32> to vector<8xf32>
    %34 = vector.shape_cast %33 : vector<8xf32> to vector<8x1xf32>
    %35 = vector.broadcast %34 : vector<8x1xf32> to vector<8x128xf32>
    %36 = arith.subf %32, %35 : vector<8x128xf32>
    %37 = math.exp %36 : vector<8x128xf32>
    %cst_12 = arith.constant dense<0.000000e+00> : vector<8xf32>
    %38 = vector.multi_reduction <add>, %37, %cst_12 [1] : vector<8x128xf32> to vector<8xf32>
    %39 = vector.shape_cast %38 : vector<8xf32> to vector<8x1xf32>
    %40 = tpu.reciprocal %39 {approx = true} : vector<8x1xf32> -> vector<8x1xf32>
    %41 = arith.mulf %39, %40 : vector<8x1xf32>
    %cst_13 = arith.constant 2.000000e+00 : f32
    %42 = vector.broadcast %cst_13 : f32 to vector<8x1xf32>
    %43 = arith.subf %42, %41 : vector<8x1xf32>
    %44 = arith.mulf %40, %43 : vector<8x1xf32>
    %45 = vector.broadcast %44 : vector<8x1xf32> to vector<8x128xf32>
    %46 = arith.mulf %37, %45 : vector<8x128xf32>
    %47 = arith.select %14, %30, %46 : vector<8x128xi1>, vector<8x128xf32>
    %48 = arith.select %9, %6, %47 : vector<8x128xi1>, vector<8x128xf32>
    %c0_14 = arith.constant 0 : index
    %c0_15 = arith.constant 0 : index
    %49 = vector.load %arg4[%c0_14, %c0_15] : memref<8x128xf32, #tpu.memory_space<vmem>>, vector<8x128xf32>
    tpu.vector_store %arg4[%c0_14, %c0_15], %48 {strides = array<i32>} : memref<8x128xf32, #tpu.memory_space<vmem>>, vector<8x128xf32>,
    return
  }
  func.func @transform_0(%arg0: i32) -> (i32, i32) {
    %c0_i32 = arith.constant 0 : i32
    %c0_i32_0 = arith.constant 0 : i32
    return %arg0, %c0_i32 : i32, i32
  }
  func.func @transform_1(%arg0: i32) -> (i32, i32) {
    %c0_i32 = arith.constant 0 : i32
    %c0_i32_0 = arith.constant 0 : i32
    %c0_i32_1 = arith.constant 0 : i32
    return %c0_i32, %c0_i32_0 : i32, i32
  }
  func.func @transform_2(%arg0: i32) -> (i32, i32) {
    %c0_i32 = arith.constant 0 : i32
    %c0_i32_0 = arith.constant 0 : i32
    %c0_i32_1 = arith.constant 0 : i32
    return %c0_i32, %c0_i32_0 : i32, i32
  }
  func.func @transform_3(%arg0: i32) -> (i32, i32) {
    %c0_i32 = arith.constant 0 : i32
    %c0_i32_0 = arith.constant 0 : i32
    return %arg0, %c0_i32 : i32, i32
  }
}

</mosaic_0001>

<bundles_post_ra>
// kernel: mixture_gaussian_head_packed.1
= control target key start
LH: loop header
LB: loop body
LE: loop exit
PB: predicated region body
PF: predicated region fallthrough
CT: control target
= control target key end

     0   :  { %8 = vsyncpa [#allocation3], 0  ;;  %s314_s0 = inlined_call_operand.hbm [shape: f32[8,32], index: 0, kind: input, shape index: {}]   ;;  %s315_s1 = inlined_call_operand.hbm [shape: bf16[32,128], index: 1, kind: input, shape index: {}]   ;;  %s316_s2 = inlined_call_operand.vmem [shape: f32[1,128], index: 2, kind: input, shape index: {}]   ;;  %s317_s3 = inlined_call_operand.hbm [shape: f32[8,128], index: 3, kind: output, shape index: {}]  }
   0x1   :  { %9 = vsyncpa [#allocation6], 0 }
   0x2   :  { %10 = vsyncpa [#allocation4], 0  ;;  %s275_s12 = smov [#allocation2]   ;;  %s276_s14 = smov [#allocation5]  }
   0x3   :  { %s17_s13 = sshll.u32 %s275_s12, 4  ;;  %s26_s15 = sshll.u32 %s276_s14, 4  ;;  %s18_s13 = int_to_ptr.vmem [resolvable:$true] %s17_s13  ;;  %s27_s15 = int_to_ptr.vmem [resolvable:$true] %s26_s15 }
   0x4   :  { %s217_s16 = scalar_lea.vmem %s18_s13, 128  ;;  %p222_p1 = scmp.lt.s32.totalorder %s18_s13, %s18_s13 }
   0x5   :  { %p218_p0 = scmp.ne.s32.totalorder %s18_s13, %s217_s16  ;;  %p223_p2 = scmp.lt.s32.totalorder %s217_s16, %s217_s16 }
   0x7   :  { %p224_p3 = por %p223_p2, %p222_p1 }
   0x9   :  { %p225_p4 = pnand %p224_p3, %p218_p0 }
   0xb   :  { %228 = shalt.err (!%p225_p4)
}
   0xc   :  { %20 = dma.hbm_to_vmem [thread:$0]  %s314_s0, 128, %s18_s13, [#allocation3]  }
   0xd   :  { %s237_s19 = scalar_lea.vmem %s27_s15, 256  ;;  %p242_p6 = scmp.lt.s32.totalorder %s27_s15, %s27_s15 }
   0xe   :  { %p238_p5 = scmp.ne.s32.totalorder %s27_s15, %s237_s19  ;;  %p243_p7 = scmp.lt.s32.totalorder %s237_s19, %s237_s19 }
  0x10   :  { %p244_p8 = por %p243_p7, %p242_p6 }
  0x12   :  { %p245_p9 = pnand %p244_p8, %p238_p5 }
  0x14   :  { %248 = shalt.err (!%p245_p9)
}
  0x15   :  { %s277_s20 = smov 64   ;;  %s278_s21 = smov 4  }
  0x16   :  { %32 = dma.hbm_to_vmem [thread:$0]  %s315_s1, 256, %s27_s15, [#allocation6], %s277_s20, %s277_s20, %s278_s21  }
  0x17   :  { %269 = dma.done.wait [#allocation3], 128  }
  0x18   :  { %270 = vsyncadd [#allocation3], 4294967168 }
  0x19   :  { %271 = dma.done.wait [#allocation6], 256  }
  0x1a   :  { %272 = vsyncadd [#allocation6], 4294967040  ;;  %v279_v0 = vmov 0.0   ;;  %vm280_vm0 = vmmov 0   ;;  %v197_v1 = vld [vmem:[#allocation5 + $0x8] sm:$0xff]   ;;  %v198_v2 = vld [vmem:[#allocation5] sm:$0xff]   ;;  %v111_v5 = vlaneseq }
  0x1b   :  { %182 = vmatprep.subr.bf16.mxu0 %v279_v0  ;;  %186 = vmatprep.mubr.msk.bf16.mxu0 %vm280_vm0, %v279_v0  ;;  %v42_v3 = vld [vmem:[#allocation2] sm:$0xff]  ;;  %vm67_vm1 = vcmask 261120  }
  0x1c   :  { %183 = vmatpush3.bf16.msra.mxu0 %v197_v1  ;;  %v43_v4 = vpack.c.bf16 %v42_v3, %v42_v3  ;;  %v112_v6 = vand.u32 127, %v111_v5  ;;  %v175_v7 = vld [vmem:[%s316_s2] ss:$0 sm:$0xff]  ;;  %s281_s2 = smov [#allocation7]  }
  0x1d   :  { %184 = vmatprep.subr.bf16.mxu0 %v279_v0  ;;  %s165_s24 = sshll.u32 %s281_s2, 4  ;;  %s166_s24 = int_to_ptr.vmem [resolvable:$true] %s165_s24 }
  0x1e   :  { %vm117_vm2 = vcmp.ge.s32.totalorder %v112_v6, 80  ;;  %vm118_vm3 = vcmp.lt.s32.totalorder %v112_v6, 120  ;;  %vm114_vm6 = vcmp.ge.s32.totalorder %v112_v6, 40  ;;  %vm115_vm7 = vcmp.lt.s32.totalorder %v112_v6, 80  ;;  %s249_s25 = scalar_lea.vmem %s166_s24, 128  ;;  %p254_p11 = scmp.lt.s32.totalorder %s166_s24, %s166_s24 }
  0x1f   :  { %vm119_vm4 = vmand %vm117_vm2, %vm118_vm3  ;;  %vm113_vm10 = vcmp.lt.s32.totalorder %v112_v6, 40  ;;  %p250_p10 = scmp.ne.s32.totalorder %s166_s24, %s249_s25  ;;  %p255_p12 = scmp.lt.s32.totalorder %s249_s25, %s249_s25 }
  0x20   :  { %185 = vmatpush3.bf16.msra.mxu0 %v198_v2  ;;  %vm116_vm9 = vmand %vm114_vm6, %vm115_vm7 }
  0x21   :  { %p256_p13 = por %p255_p12, %p254_p11 }
  0x23   :  { %187 = vmatmul.mubr.msk.bf16.vlgmr.msra.gmra.mxu0 %vm67_vm1, %v43_v4  ;;  %p257_p0 = pnand %p256_p13, %p250_p10 }
  0xe3   :  { %v105_v8 = vpop.f32.mrf.mxu0 }
  0xe4   :  { %v106_v9 = vadd.f32 %v175_v7, %v105_v8 }
  0xe5   :  { %v188_v10 = vpop.f32.mrf.mxu0 }
  0xe6   :  { %v143_v11 = vsel %vm119_vm4, %v106_v9, -1e+30  ;;  %v121_v18 = vand.u32 2147483647, %v106_v9  ;;  %v120_v30 = vmax.f32 %v106_v9, 0.0 }
  0xe7   :  { %144 = vmax.xlane.f32.xlu0 %v143_v11  ;;  %v108_v12 = vpop.f32.mrf.mxu0 }
  0xe8   :  { %v122_v19 = vsub.f32 0.0, %v121_v18 }
  0xe9   :  { %v189_v13 = vpop.f32.mrf.mxu0 }
  0xea   :  { %v123_v20 = vmul.f32 1.442695, %v122_v19 }
 0x170   :  { %v145_v14 = vpop.xlane.xlu0 %144 }
 0x171   :  { %v146_v15 = vsub.f32 %v143_v11, %v145_v14 }
 0x173   :  { %v147_v16 = vmul.f32 1.442695, %v146_v15 }
 0x175   :  { %199 = vpow2.f32 %v147_v16 }
 0x176   :  { %201 = vpow2.f32 %v123_v20 }
 0x182   :  { %v200_v17 = vpop.eup %199 }
 0x183   :  { %149 = vadd.xlane.f32.xlu0 %v200_v17  ;;  %v202_v21 = vpop.eup %201 }
 0x184   :  { %v125_v22 = vadd.f32 1.0, %v202_v21  ;;  %v128_v23 = vmul.f32 -0.5, %v202_v21  ;;  %v131_v26 = vand.u32 2147483647, %v202_v21 }
 0x186   :  { %203 = vlog2.f32 %v125_v22  ;;  %v129_v25 = vadd.f32 1.0, %v128_v23  ;;  %vm132_vm5 = vcmp.lt.f32.partialorder %v131_v26, 0.0004427343 }
 0x188   :  { %v130_v28 = vmul.f32 %v202_v21, %v129_v25 }
 0x193   :  { %v204_v24 = vpop.eup %203 }
 0x194   :  { %v127_v27 = vmul.f32 0.6931472, %v204_v24 }
 0x196   :  { %v133_v29 = vsel %vm132_vm5, %v130_v28, %v127_v27 }
 0x197   :  { %v134_v31 = vadd.f32 %v133_v29, %v120_v30 }
 0x199   :  { %205 = vrsqrt.f32 %v134_v31  ;;  %vm138_vm8 = vcmp.eq.f32.partialorder %v134_v31, inf  ;;  %v141_v40 = vand.u32 2147483648, %v134_v31  ;;  %vm140_vm11 = vcmp.eq.f32.partialorder %v134_v31, 0.0 }
 0x1a6   :  { %v206_v33 = vpop.eup %205 }
 0x1a7   :  { %v137_v36 = vmul.f32 %v206_v33, %v134_v31 }
 0x1a9   :  { %v139_v39 = vsel %vm138_vm8, %v134_v31, %v137_v36 }
 0x1aa   :  { %v142_v42 = vsel %vm140_vm11, %v141_v40, %v139_v39 }
 0x20c   :  { %v150_v32 = vpop.xlane.xlu0 %149 }
 0x20d   :  { %207 = vrcp.f32 %v150_v32 }
 0x21a   :  { %v208_v34 = vpop.eup %207 }
 0x21b   :  { %v152_v35 = vmul.f32 %v208_v34, %v150_v32 }
 0x21d   :  { %v153_v37 = vsub.f32 2.0, %v152_v35 }
 0x21f   :  { %v154_v38 = vmul.f32 %v208_v34, %v153_v37 }
 0x221   :  { %v155_v41 = vmul.f32 %v200_v17, %v154_v38 }
 0x223   :  { %v156_v43 = vsel %vm116_vm9, %v142_v42, %v155_v41 }
 0x224   :  { %v157_v44 = vsel %vm113_vm10, %v106_v9, %v156_v43 }
 0x225   :  { %158 = vst [vmem:[#allocation7] sm:$0xff] %v157_v44 }
 0x226   :  { %260 = shalt.err (!%p257_p0)
}
 0x227   :  { %168 = dma.vmem_to_hbm [thread:$0]  %s166_s24, 128, %s317_s3, [#allocation4]  }
 0x228   :  { %273 = dma.done.wait [#allocation4], 128  }
 0x229   :  { %274 = vsyncadd [#allocation4], 4294967168 }
 0x22a   :  { %172 = vsyncpa [#allocation3], 1 }
 0x22b   :  { %173 = vsyncpa [#allocation6], 1 }
 0x22c   :  { %174 = vsyncpa [#allocation4], 1 }

</bundles_post_ra>
